<compile_context>
chip_gen: v7x
topology: tpu7x:2x2x1
jax: 0.10.0
libtpu: 0.0.40
codegen_flags: <defaults>
</compile_context>

<pallas_src>
import functools

import jax
import jax.numpy as jnp
from jax.experimental import pallas as pl
from jax.experimental.pallas import tpu as pltpu


def _round_up(x, m):
    return (x + m - 1) // m * m


def _patch_embed_kernel(x_ref, w_ref, b_ref, o_ref):
    # x_ref: (TM, K)  one M-tile of patch rows (streamed / pipelined)
    # w_ref: (K, N)   projection matrix, whole-array VMEM resident
    # b_ref: (1, N)   bias (f32), whole-array VMEM resident
    # o_ref: (TM, N)
    acc = jnp.dot(x_ref[...], w_ref[...], preferred_element_type=jnp.float32)
    o_ref[...] = (acc + b_ref[...]).astype(o_ref.dtype)


def patch_embed_matmul(patches, w_mat, bias, *, out_dtype, tile_m):
    M, K = patches.shape
    _, N = w_mat.shape
    grid_m = pl.cdiv(M, tile_m)

    cost = pl.CostEstimate(
        flops=2 * M * K * N,
        transcendentals=0,
        bytes_accessed=(
            M * K * patches.dtype.itemsize
            + K * N * w_mat.dtype.itemsize
            + N * bias.dtype.itemsize
            + M * N * jnp.dtype(out_dtype).itemsize
        ),
    )

    return pl.pallas_call(
        _patch_embed_kernel,
        out_shape=jax.ShapeDtypeStruct((M, N), out_dtype),
        grid_spec=pltpu.PrefetchScalarGridSpec(
            num_scalar_prefetch=0,
            grid=(grid_m,),
            in_specs=[
                # Streamed over M (double-buffered by the pipeline). Ragged
                # tail block is masked by Pallas; tail rows are never stored.
                pl.BlockSpec((tile_m, K), lambda i: (i, 0)),
                # Resident weight / bias: whole array in VMEM, single buffer.
                pl.BlockSpec(memory_space=pltpu.MemorySpace.VMEM),
                pl.BlockSpec(memory_space=pltpu.MemorySpace.VMEM),
            ],
            out_specs=pl.BlockSpec((tile_m, N), lambda i: (i, 0)),
        ),
        compiler_params=pltpu.CompilerParams(
            dimension_semantics=("parallel",),   # megacore-shard the M axis
            vmem_limit_bytes=64 * 1024 * 1024,   # v5e default scoped is 16 MiB
        ),
        cost_estimate=cost,
    )(patches, w_mat, bias)


def patch_embed_forward(x, conv_weight, conv_bias, img_size, patch_size,
                        compute_dtype=jnp.bfloat16, out_dtype=None):
    """x: (B, C, H, W) NCHW (matches PyTorch). Returns (B, num_patches, E)."""
    B, C, H, W = x.shape
    ph, pw = patch_size
    assert H == img_size[0] and W == img_size[1], (
        f"Input image size ({H}*{W}) doesn't match model "
        f"({img_size[0]}*{img_size[1]})."
    )
    Hp, Wp = H // ph, W // pw
    E = conv_weight.shape[0]
    M = B * Hp * Wp
    K = C * ph * pw

    cdt = jnp.dtype(compute_dtype)
    odt = x.dtype if out_dtype is None else jnp.dtype(out_dtype)

    # Patch gather: cast to the compute dtype *first* so the one materialized
    # (M, K) relayout copy is half-width; XLA fuses cast+transpose+pad into a
    # single burst-friendly copy.  Patch vector ordered (C, ph, pw) to match
    # the PyTorch conv weight layout (E, C, ph, pw); rows ordered (B, Hp, Wp)
    # to match flatten(2).transpose(1,2).
    patches = x.astype(cdt).reshape(B, C, Hp, ph, Wp, pw)
    patches = jnp.transpose(patches, (0, 2, 4, 1, 3, 5)).reshape(M, K)

    w_mat = conv_weight.reshape(E, K).T.astype(cdt)            # (K, E)
    bias = conv_bias.reshape(1, E).astype(jnp.float32)         # f32 bias add

    # Pad K / N to lane multiples only when needed.  Zero padding is exact:
    # padded K columns multiply zero weight rows; padded E columns get sliced.
    k_pad = _round_up(K, 128)
    n_pad = _round_up(E, 128)
    if k_pad != K:
        patches = jnp.pad(patches, ((0, 0), (0, k_pad - K)))
        w_mat = jnp.pad(w_mat, ((0, k_pad - K), (0, 0)))
    if n_pad != E:
        w_mat = jnp.pad(w_mat, ((0, 0), (0, n_pad - E)))
        bias = jnp.pad(bias, ((0, 0), (0, n_pad - E)))

    # Tile M: near-even blocks <= 512 rows (no pathological padding — the
    # ragged tail is masked), and >= 2 blocks when possible so both v7x
    # TensorCores get work.
    max_tile = 512
    n_blocks = pl.cdiv(M, max_tile)
    if n_blocks == 1 and M >= 32:
        n_blocks = 2
    tile_m = min(M, _round_up(pl.cdiv(M, n_blocks), 16))

    out = patch_embed_matmul(patches, w_mat, bias, out_dtype=odt,
                             tile_m=tile_m)                    # (M, n_pad)
    if n_pad != E:
        out = out[:, :E]
    return out.reshape(B, Hp * Wp, E)


if __name__ == "__main__":
    # Small, self-consistent configuration.
    B, C = 2, 4
    img_size = (16, 16)
    patch_size = (4, 4)
    embed_dim = 32

    key = jax.random.PRNGKey(0)
    kx, kw, kb = jax.random.split(key, 3)

    x = jax.random.normal(kx, (B, C, img_size[0], img_size[1]), dtype=jnp.float32)
    # Conv2d weight (E, C, ph, pw) and bias (E,), deterministic init.
    conv_weight = jax.random.normal(
        kw, (embed_dim, C, patch_size[0], patch_size[1]), dtype=jnp.float32
    ) * 0.02
    conv_bias = jax.random.normal(kb, (embed_dim,), dtype=jnp.float32) * 0.02

    fwd_bf16 = jax.jit(functools.partial(                     # default: bf16 compute
        patch_embed_forward, img_size=img_size, patch_size=patch_size))
    fwd_f32 = jax.jit(functools.partial(
        patch_embed_forward, img_size=img_size, patch_size=patch_size,
        compute_dtype=jnp.float32))

    out_bf16 = jax.block_until_ready(fwd_bf16(x, conv_weight, conv_bias))
    out_f32 = jax.block_until_ready(fwd_f32(x, conv_weight, conv_bias))

    # Sanity check against plain-JAX reference (conv as patch matmul).
    Hp, Wp = img_size[0] // patch_size[0], img_size[1] // patch_size[1]
    ref_patches = jnp.transpose(
        x.reshape(B, C, Hp, patch_size[0], Wp, patch_size[1]), (0, 2, 4, 1, 3, 5)
    ).reshape(B * Hp * Wp, -1)
    ref = (ref_patches @ conv_weight.reshape(embed_dim, -1).T + conv_bias).reshape(
        B, Hp * Wp, embed_dim
    )
    assert out_f32.shape == (B, Hp * Wp, embed_dim)
    assert out_bf16.shape == (B, Hp * Wp, embed_dim)
    assert jnp.allclose(out_f32, ref, atol=1e-4, rtol=1e-4)
    # bf16 inputs, f32 accumulation: looser tolerance.
    assert jnp.allclose(out_bf16, ref, atol=5e-2, rtol=5e-2)

    print("KERNEL_OK")
</pallas_src>

<mosaic_0001>
module attributes {stable_mosaic.version = 11 : i64} {
  func.func @_patch_embed_kernel(%arg0: i32, %arg1: memref<16x128xbf16, #tpu.memory_space<vmem>>, %arg2: memref<128x128xbf16, #tpu.memory_space<vmem>>, %arg3: memref<1x128xf32, #tpu.memory_space<vmem>>, %arg4: memref<16x128xf32, #tpu.memory_space<vmem>>) attributes {dimension_semantics = [#tpu.dimension_semantics<parallel>], iteration_bounds = array<i64: 2>, scalar_prefetch = 0 : i64, scratch_operands = 0 : i64, tpu.core_type = #tpu.core_type<tc>, window_params = [{transform_indices = @transform_0, window_bounds = array<i64: 16, 128>}, {pipeline_mode = #tpu.pipeline_mode<synchronous>, transform_indices = @transform_1, window_bounds = array<i64: 128, 128>}, {pipeline_mode = #tpu.pipeline_mode<synchronous>, transform_indices = @transform_2, window_bounds = array<i64: 1, 128>}, {transform_indices = @transform_3, window_bounds = array<i64: 16, 128>}]} {
    %c0 = arith.constant 0 : index
    %c0_0 = arith.constant 0 : index
    %0 = vector.load %arg1[%c0, %c0_0] : memref<16x128xbf16, #tpu.memory_space<vmem>>, vector<16x128xbf16>
    %c0_1 = arith.constant 0 : index
    %c0_2 = arith.constant 0 : index
    %1 = vector.load %arg2[%c0_1, %c0_2] : memref<128x128xbf16, #tpu.memory_space<vmem>>, vector<128x128xbf16>
    %cst = arith.constant dense<0.000000e+00> : vector<16x128xf32>
    %2 = tpu.matmul %0, %1, %cst {dimension_numbers = #tpu.dot_dimension_numbers<[1], [0], [0], [1], [0, 0, 1, 1], [], []>} : vector<16x128xbf16>, vector<128x128xbf16>, vector<16x128xf32> -> vector<16x128xf32>
    %c0_3 = arith.constant 0 : index
    %c0_4 = arith.constant 0 : index
    %3 = vector.load %arg3[%c0_3, %c0_4] : memref<1x128xf32, #tpu.memory_space<vmem>>, vector<1x128xf32>
    %4 = vector.broadcast %3 : vector<1x128xf32> to vector<16x128xf32>
    %5 = arith.addf %2, %4 : vector<16x128xf32>
    %c0_5 = arith.constant 0 : index
    %c0_6 = arith.constant 0 : index
    %6 = vector.load %arg4[%c0_5, %c0_6] : memref<16x128xf32, #tpu.memory_space<vmem>>, vector<16x128xf32>
    tpu.vector_store %arg4[%c0_5, %c0_6], %5 {strides = array<i32>} : memref<16x128xf32, #tpu.memory_space<vmem>>, vector<16x128xf32>,
    return
  }
  func.func @transform_0(%arg0: i32) -> (i32, i32) {
    %c0_i32 = arith.constant 0 : i32
    %c0_i32_0 = arith.constant 0 : i32
    return %arg0, %c0_i32 : i32, i32
  }
  func.func @transform_1(%arg0: i32) -> (i32, i32) {
    %c0_i32 = arith.constant 0 : i32
    %c0_i32_0 = arith.constant 0 : i32
    %c0_i32_1 = arith.constant 0 : i32
    return %c0_i32, %c0_i32_0 : i32, i32
  }
  func.func @transform_2(%arg0: i32) -> (i32, i32) {
    %c0_i32 = arith.constant 0 : i32
    %c0_i32_0 = arith.constant 0 : i32
    %c0_i32_1 = arith.constant 0 : i32
    return %c0_i32, %c0_i32_0 : i32, i32
  }
  func.func @transform_3(%arg0: i32) -> (i32, i32) {
    %c0_i32 = arith.constant 0 : i32
    %c0_i32_0 = arith.constant 0 : i32
    return %arg0, %c0_i32 : i32, i32
  }
}

</mosaic_0001>

<bundles_post_ra>
// kernel: patch_embed_forward.1
= control target key start
LH: loop header
LB: loop body
LE: loop exit
PB: predicated region body
PF: predicated region fallthrough
CT: control target
= control target key end

     0   :  { %8 = vsyncpa [#allocation3], 0  ;;  %s1021_s0 = inlined_call_operand.hbm [shape: bf16[32,128], index: 0, kind: input, shape index: {}]   ;;  %s1022_s1 = inlined_call_operand.hbm [shape: bf16[128,128], index: 1, kind: input, shape index: {}]   ;;  %s1023_s2 = inlined_call_operand.hbm [shape: f32[1,128], index: 2, kind: input, shape index: {}]   ;;  %s1024_s3 = inlined_call_operand.hbm [shape: f32[32,128], index: 3, kind: output, shape index: {}]  }
   0x1   :  { %10 = vsyncpa [#allocation3 + $0x1], 0 }
   0x2   :  { %11 = vsyncpa [#allocation6], 0 }
   0x3   :  { %12 = vsyncpa [#allocation4], 0 }
   0x4   :  { %14 = vsyncpa [#allocation4 + $0x1], 0  ;;  %s776_s12 = smov 0   ;;  %s778_s13 = smov 0  }
   0x5   :  { %s780_s14 = smov 0   ;;  %s782_s15 = smov 0  }
   0x6 LB: > { %s797_s16 = sadd.s32 4294967295, %s744_s15   ;;  %s447_s17 = sadd.s32 4294967294, %s744_s15   ;;  %s744_s15 = sphi %s782_s15, %s1044_s15   ;;  %s740_s14 = sphi %s780_s14, %s1043_s14   ;;  %s736_s13 = sphi %s778_s13, %s1042_s13   ;;  %s732_s12 = sphi %s776_s12, %s1041_s12  }
   0x7   : > { %p40_p0 = scmp.ne.s32.totalorder %s736_s13, %s732_s12  ;;  %p1025_p1 = scmp.eq.s32.totalorder %s797_s16, 0 }
   0x8   : > { %p112_p3 = scmp.eq.s32.totalorder %s447_s17, 1  ;;  %p448_p5 = scmp.ge.s32.totalorder %s744_s15, 1 }
   0x9   : > { %p806_p4 = por %p1025_p1, %p40_p0  ;;  %p119_p7 = scmp.lt.s32.totalorder %s744_s15, 3 }
   0xa   : > { %p811_p6 = por %p112_p3, %p40_p0  ;;  %s746_s21 = smov [#allocation5]  }
   0xb   : > { %s1028_s18 = scalar_select %p806_p4, 1, 0 }
   0xc   : > { %s1029_s19 = scalar_select %p811_p6, 1, 0 }
   0xd   : > { %p816_p8 = pnand %p448_p5, %p119_p7  ;;  %s131_s22 = sshll.u32 %s746_s21, 4  ;;  %s820_s22 = int_to_ptr.vmem [resolvable:$true] %s131_s22 }
   0xe   : > { %s747_s24 = smov [#allocation7]   ;;  %s588_s28 = scalar_lea.hbm %s1022_s1, 1024 }
   0xf   : > { %p518_p9 = pneg %p816_p8  ;;  %s145_s25 = sshll.u32 %s747_s24, 4  ;;  %s831_s25 = int_to_ptr.vmem [resolvable:$true] %s145_s25 }
  0x10   : > { %p589_p12 = scmp.ne.s32.totalorder %s1022_s1, %s588_s28  ;;  %p595_p5 = scmp.lt.u32.totalorder %s588_s28, %s1022_s1 }
  0x11   : > { %p827_p11 = pnand %p518_p9, %p1025_p1 }
  0x13   : > { %p590_p13 = pneg %p827_p11 }
  0x15   : > { %p591_p0 = pnand %p590_p13, %p589_p12 }
  0x17   : > { %p592_p3 = pneg %p591_p0 }
  0x19   : > { %p597_p7 = pnand %p595_p5, %p592_p3 }
  0x1b   : > { %600 = shalt.err (!%p597_p7)
}
  0x1c   : > { %s601_s6 = scalar_lea.vmem %s820_s22, 1024  ;;  %p609_p2 = scmp.lt.s32.totalorder %s820_s22, %s820_s22 }
  0x1d   : > { %p602_p9 = scmp.ne.s32.totalorder %s820_s22, %s601_s6  ;;  %p610_p12 = scmp.lt.s32.totalorder %s601_s6, %s601_s6 }
  0x1f   : > { %p604_p10 = pnand %p602_p9, %p590_p13  ;;  %p611_p0 = por %p610_p12, %p609_p2 }
  0x21   : > { %p605_p1 = pneg %p604_p10 }
  0x23   : > { %p612_p6 = pnand %p611_p0, %p605_p1 }
  0x25   : > { %615 = shalt.err (!%p612_p6)
}
  0x26   : > { %s748_s7 = smov 64   ;;  %s749_s8 = smov 4  }
  0x27   : > { %521 = dma.hbm_to_vmem [thread:$0]  (!%p827_p11), %s1022_s1, 1024, %s820_s22, [#allocation6], %s748_s7, %s748_s7, %s749_s8  }
  0x28   : > { %s616_s21 = scalar_lea.hbm %s1023_s2, 16 }
  0x29   : > { %p617_p1 = scmp.ne.s32.totalorder %s1023_s2, %s616_s21  ;;  %p623_p10 = scmp.lt.u32.totalorder %s616_s21, %s1023_s2 }
  0x2b   : > { %p619_p2 = pnand %p617_p1, %p590_p13 }
  0x2d   : > { %p620_p6 = pneg %p619_p2 }
  0x2f   : > { %p625_p3 = pnand %p623_p10, %p620_p6 }
  0x31   : > { %628 = shalt.err (!%p625_p3)
}
  0x32   : > { %s629_s22 = scalar_lea.vmem %s831_s25, 16  ;;  %s636_s29 = scalar_lea.vmem %s831_s25, 32 }
  0x33   : > { %p630_p5 = scmp.ne.s32.totalorder %s831_s25, %s629_s22  ;;  %p637_p12 = scmp.lt.s32.totalorder %s831_s25, %s831_s25 }
  0x34   : > { %p638_p0 = scmp.lt.s32.totalorder %s636_s29, %s629_s22 }
  0x35   : > { %p632_p7 = pnand %p630_p5, %p590_p13 }
  0x36   : > { %p639_p1 = por %p638_p0, %p637_p12 }
  0x37   : > { %p633_p9 = pneg %p632_p7 }
  0x39   : > { %p640_p2 = pnand %p639_p1, %p633_p9 }
  0x3b   : > { %643 = shalt.err (!%p640_p2)
}
  0x3c   : > { %524 = dma.hbm_to_vmem [thread:$0]  (!%p827_p11), %s1023_s2, 16, %s831_s25, [#allocation6]  }
  0x3d   : > { %s890_s5 = sadd.s32 1, %s744_s15   ;;  %s27_s23 = sadd.s32 1, %s740_s14 }
  0x3e   : > { %s24_s6 = ssub.s32 %s744_s15, %s890_s5  ;;  %p34_p13 = scmp.ne.s32.totalorder %s740_s14, %s736_s13 }
  0x3f   : > { %p25_p6 = scmp.eq.s32.totalorder %s24_s6, 0  ;;  %p35_p10 = scmp.eq.s32.totalorder %s744_s15, 0 }
  0x40   : > { %p1032_p3 = scmp.eq.s32.totalorder %s797_s16, 1  ;;  %p535_p7 = scmp.lt.s32.totalorder %s744_s15, 2 }
  0x41   : > { %s906_s10 = scalar_select %p25_p6, %s740_s14, %s27_s23  }
  0x42   : > { %p900_p5 = por %p1032_p3, %p34_p13  ;;  %p36_p9 = por %p35_p10, %p34_p13 }
  0x43   : > { %s156_s11 = sand.u32 1, %s740_s14   ;;  %s475_s25 = sshll.u32 %s744_s15, 7 }
  0x44   : > { %s1033_s9 = scalar_select %p900_p5, 1, 0 }
  0x45   : > { %s452_s17 = sshll.u32 %s156_s11, 3  ;;  %s913_s26 = scalar_lea.hbm %s1021_s0, %s475_s25 }
  0x46   : > { %s160_s27 = scalar_lea.vmem [#allocation2], %s452_s17  ;;  %p917_p11 = pnand %p535_p7, %p36_p9 }
  0x47   : > { %s167_s28 = sshll.u32 %s160_s27, 4  ;;  %s921_s29 = scalar_lea.sflag [#allocation3], %s156_s11  ;;  %s915_s28 = int_to_ptr.vmem [resolvable:$true] %s167_s28 }
  0x48   : > { %s644_s30 = scalar_lea.hbm %s913_s26, 128  ;;  %p646_p0 = pneg %p917_p11 }
  0x49   : > { %p645_p12 = scmp.ne.s32.totalorder %s913_s26, %s644_s30  ;;  %s649_s6 = scalar_lea.hbm %s1021_s0, 256 }
  0x4a   : > { %p650_p13 = scmp.lt.u32.totalorder %s913_s26, %s1021_s0  ;;  %p651_p6 = scmp.lt.u32.totalorder %s649_s6, %s644_s30 }
  0x4b   : > { %p647_p1 = pnand %p646_p0, %p645_p12  ;;  %p653_p3 = scmp.lt.u32.totalorder %s644_s30, %s913_s26 }
  0x4c   : > { %p652_p10 = por %p651_p6, %p650_p13 }
  0x4d   : > { %p648_p2 = pneg %p647_p1 }
  0x4e   : > { %p654_p7 = por %p653_p3, %p652_p10 }
  0x50   : > { %p655_p9 = pnand %p654_p7, %p648_p2 }
  0x52   : > { %658 = shalt.err (!%p655_p9)
}
  0x53   : > { %s659_s11 = scalar_lea.vmem %s915_s28, 128  ;;  %s750_s21 = smov [#allocation2]  }
  0x54   : > { %p660_p12 = scmp.ne.s32.totalorder %s915_s28, %s659_s11  ;;  %s664_s24 = sshll.u32 %s750_s21, 4  ;;  %s665_s24 = int_to_ptr.vmem [resolvable:$false] %s664_s24 }
  0x55   : > { %s666_s27 = scalar_lea.vmem %s665_s24, 256  ;;  %p667_p4 = scmp.lt.s32.totalorder %s915_s28, %s665_s24 }
  0x56   : > { %p662_p1 = pnand %p660_p12, %p646_p0  ;;  %p668_p13 = scmp.lt.s32.totalorder %s666_s27, %s659_s11 }
  0x58   : > { %p663_p5 = pneg %p662_p1  ;;  %p669_p6 = por %p668_p13, %p667_p4 }
  0x5a   : > { %p670_p10 = pnand %p669_p6, %p663_p5 }
  0x5c   : > { %673 = shalt.err (!%p670_p10)
}
  0x5d   : > { %528 = dma.hbm_to_vmem [thread:$0]  (!%p917_p11), %s913_s26, 128, %s915_s28, %s921_s29, %s748_s7, %s748_s7, %s749_s8  }
  0x5e   : > { %179 = sbr.rel (%p816_p8) target bundleno = 369 (0x171), region = 32  ;;  %s955_s30 = sand.u32 (!%p816_p8), 1, %s736_s13  }
  0x5f   : > { %s456_s4 = sshll.u32 (!%p816_p8), %s955_s30, 3  ;;  %s182_s23 = scalar_lea.sflag (!%p816_p8), [#allocation3], %s955_s30 }
  0x60   : > { %s959_s6 = scalar_lea.vmem (!%p816_p8), [#allocation2], %s456_s4  ;;  %p1035_p4 = scmp.ne.s32.totalorder (!%p816_p8), %s1028_s18, 0 }
  0x65   : > { %719 = dma.done.wait (%p1035_p4), %s182_s23, 128  }
  0x66   : > { %721 = vsyncadd (%p1035_p4), %s182_s23, 4294967168  ;;  %p1036_p5 = scmp.eq.s32.totalorder %s797_s16, 0 }
  0x68   : > { %723 = dma.done.wait (%p1036_p5), [#allocation6], 1040   ;;  %p1037_p8 = pmov %p1036_p5 }
  0x69   : > { %v751_v0 = vmov 0.0   ;;  %vm752_vm0 = vmmov 0   ;;  %v579_v1 = vld [vmem:[#allocation5] sm:$0xff]   ;;  %v580_v2 = vld [vmem:[#allocation5 + $0x8] sm:$0xff]   ;;  %v581_v3 = vld [vmem:[#allocation5 + $0x10] sm:$0xff]   ;;  %s459_s18 = sshll.u32 %s955_s30, 4 }
  0x6a   : > { %725 = vsyncadd (%p1037_p8), [#allocation6], 4294966256  ;;  %486 = vmatprep.subr.bf16.mxu0 %v751_v0  ;;  %502 = vmatprep.mubr.msk.bf16.mxu0 %vm752_vm0, %v751_v0  ;;  %v582_v4 = vld [vmem:[#allocation5 + $0x18] sm:$0xff]   ;;  %v583_v5 = vld [vmem:[#allocation5 + $0x20] sm:$0xff]   ;;  %s215_s20 = scalar_lea.vmem [#allocation8], %s459_s18  ;;  %s476_s8 = sshll.u32 %s797_s16, 8 }
  0x6b   : > { %487 = vmatpush3.bf16.msra.mxu0 %v579_v1  ;;  %v584_v6 = vld [vmem:[#allocation5 + $0x28] sm:$0xff]   ;;  %v585_v7 = vld [vmem:[#allocation5 + $0x30] sm:$0xff]   ;;  %v586_v8 = vld [vmem:[#allocation5 + $0x38] sm:$0xff]   ;;  %s355_s7 = sshll.u32 %s215_s20, 4  ;;  %s977_s22 = scalar_lea.hbm %s1024_s3, %s476_s8  ;;  %s972_s7 = int_to_ptr.vmem [resolvable:$true] %s355_s7 }
  0x6c   : > { %488 = vmatprep.subr.bf16.mxu0 %v751_v0  ;;  %v587_v9 = vld [vmem:[%s959_s6] sm:$0xff]   ;;  %v460_v10 = vld [vmem:[#allocation7] ss:$0 sm:$0xff]  ;;  %s342_s29 = scalar_lea.sflag [#allocation4], %s955_s30  ;;  %s674_s16 = scalar_lea.vmem %s972_s7, 256 }
  0x6d   : > { %p675_p11 = scmp.ne.s32.totalorder %s972_s7, %s674_s16  ;;  %p1038_p0 = scmp.ne.s32.totalorder %s1033_s9, 0 }
  0x6e   : > { %s753_s17 = smov [#allocation8]  }
  0x6f   : > { %489 = vmatpush3.bf16.msra.mxu0 %v580_v2  ;;  %p676_p2 = pnand %p675_p11, %p1038_p0  ;;  %s678_s25 = sshll.u32 %s753_s17, 4  ;;  %s679_s25 = int_to_ptr.vmem [resolvable:$false] %s678_s25 }
  0x70   : > { %490 = vmatprep.subr.bf16.mxu0 %v751_v0  ;;  %s680_s11 = scalar_lea.vmem %s679_s25, 512  ;;  %p681_p7 = scmp.lt.s32.totalorder %s972_s7, %s679_s25 }
  0x71   : > { %p677_p3 = pneg %p676_p2  ;;  %p682_p9 = scmp.lt.s32.totalorder %s680_s11, %s674_s16 }
  0x73   : > { %491 = vmatpush3.bf16.msra.mxu0 %v581_v3  ;;  %p683_p12 = por %p682_p9, %p681_p7 }
  0x74   : > { %492 = vmatprep.subr.bf16.mxu0 %v751_v0 }
  0x75   : > { %p684_p1 = pnand %p683_p12, %p677_p3 }
  0x77   : > { %493 = vmatpush3.bf16.msra.mxu0 %v582_v4 }
  0x78   : > { %494 = vmatprep.subr.bf16.mxu0 %v751_v0 }
  0x7b   : > { %495 = vmatpush3.bf16.msra.mxu0 %v583_v5 }
  0x7c   : > { %496 = vmatprep.subr.bf16.mxu0 %v751_v0 }
  0x7f   : > { %497 = vmatpush3.bf16.msra.mxu0 %v584_v6 }
  0x80   : > { %498 = vmatprep.subr.bf16.mxu0 %v751_v0 }
  0x83   : > { %499 = vmatpush3.bf16.msra.mxu0 %v585_v7 }
  0x84   : > { %500 = vmatprep.subr.bf16.mxu0 %v751_v0 }
  0x87   : > { %501 = vmatpush3.bf16.msra.mxu0 %v586_v8 }
  0x8a   : > { %503 = vmatmul.mubr.bf16.vlgmr.msra.gmra.mrb[0].mxu0 %v587_v9 }
 0x15d   : > { %v332_v11 = vpop.f32.mrb[0].mxu0 }
 0x15e   : > { %v333_v12 = vadd.f32 %v460_v10, %v332_v11  ;;  %v504_v13 = vpop.f32.mrb[1].mxu0 }
 0x15f   : > { %v335_v14 = vpop.f32.mrb[2].mxu0 }
 0x160   : > { %339 = vst [vmem:[%s215_s20] sm:$0xff] %v333_v12  ;;  %v336_v15 = vadd.f32 %v460_v10, %v335_v14  ;;  %v505_v16 = vpop.f32.mrb[3].mxu0 }
 0x162   : > { %340 = vst [vmem:[%s215_s20 + $0x8] sm:$0xff] %v336_v15 }
 0x163   : > { %687 = shalt.err (!%p684_p1)
}
 0x164   : > { %s688_s21 = scalar_lea.hbm %s977_s22, 256  ;;  %s692_s4 = scalar_lea.hbm %s1024_s3, 512 }
 0x165   : > { %p689_p13 = scmp.ne.s32.totalorder %s977_s22, %s688_s21  ;;  %p693_p4 = scmp.lt.u32.totalorder %s977_s22, %s1024_s3 }
 0x166   : > { %p694_p5 = scmp.lt.u32.totalorder %s692_s4, %s688_s21  ;;  %p696_p11 = scmp.lt.u32.totalorder %s688_s21, %s977_s22 }
 0x167   : > { %p690_p6 = pnand %p689_p13, %p1038_p0 }
 0x168   : > { %p695_p8 = por %p694_p5, %p693_p4 }
 0x169   : > { %p691_p10 = pneg %p690_p6 }
 0x16a   : > { %p697_p2 = por %p696_p11, %p695_p8 }
 0x16c   : > { %p698_p3 = pnand %p697_p2, %p691_p10 }
 0x16e   : > { %701 = shalt.err (!%p698_p3)
}
 0x16f   : > { %s754_s18 = smov 128   ;;  %s755_s20 = smov 8  }
 0x170   : > { %516 = dma.vmem_to_hbm [thread:$0]  (%p1038_p0), %s972_s7, 256, %s977_s22, %s342_s29, %s754_s18, %s754_s18, %s755_s20  }
 0x171 PF: > { %s370_s8 = sand.u32 1, %s732_s12   ;;  %p1039_p7 = scmp.ne.s32.totalorder %s1029_s19, 0 }
 0x172   : > { %p1040_p9 = scmp.ge.s32.totalorder %s744_s15, 2  ;;  %s371_s26 = scalar_lea.sflag [#allocation4], %s370_s8 }
 0x174   : > { %p530_p12 = pnand %p1040_p9, %p1039_p7 }
 0x176   : > { %727 = dma.done.wait (!%p530_p12), %s371_s26, 256  }
 0x177   : > { %729 = vsyncadd (!%p530_p12), %s371_s26, 4294967040  ;;  %p17_p1 = scmp.ge.s32.totalorder %s890_s5, 4   ;;  %s1041_s12 = smov %s736_s13 }
 0x178   : > { %s1042_s13 = smov %s740_s14  ;;  %s1043_s14 = smov %s906_s10 }
 0x179   : > { %s1044_s15 = smov %s890_s5  ;;  %19 = sbr.rel (!%p17_p1) target bundleno = 6 (0x6), region = 85 }
 0x180   :  { %376 = vsyncpa [#allocation3], 1 }
 0x181   :  { %378 = vsyncpa [#allocation3 + $0x1], 1 }
 0x182   :  { %379 = vsyncpa [#allocation6], 1 }
 0x183   :  { %380 = vsyncpa [#allocation4], 1 }
 0x184   :  { %382 = vsyncpa [#allocation4 + $0x1], 1 }

</bundles_post_ra>
